<compile_context>
chip_gen: v7x
topology: tpu7x:2x2x1
jax: 0.10.0
libtpu: 0.0.40
codegen_flags: <defaults>
</compile_context>

<pallas_src>
import functools

import jax
import jax.numpy as jnp
from jax.experimental import pallas as pl
from jax.experimental.pallas import tpu as pltpu

_LANE = 128
_SUBLANE = 8
_MiB = 1024 * 1024


# --------------------------------------------------------------------------
# Kernels
# --------------------------------------------------------------------------
def _swish_kernel(x_ref, o_ref, *, compute_dtype):
    # Non-trainable path: no beta stream, no extra multiply.
    x = x_ref[...].astype(compute_dtype)
    o_ref[...] = (x * jax.nn.sigmoid(x)).astype(o_ref.dtype)


def _swish_beta_kernel(x_ref, beta_ref, o_ref, *, compute_dtype):
    # x_ref:    (rows_tile, cols_tile) VMEM
    # beta_ref: (rows_tile, 1)         VMEM per-channel beta, lane-broadcast
    xb = x_ref[...].astype(compute_dtype) * beta_ref[...].astype(compute_dtype)
    o_ref[...] = (xb * jax.nn.sigmoid(xb)).astype(o_ref.dtype)


# --------------------------------------------------------------------------
# Hardware / tiling helpers
# --------------------------------------------------------------------------
def _round_up(x, m):
    return ((x + m - 1) // m) * m


def _vmem_capacity_bytes():
    try:
        return int(pltpu.get_tpu_info().vmem_capacity_bytes)
    except Exception:
        return 64 * _MiB  # v7x lower bound -- safe default on every generation


def _target_tile_bytes(vmem_total):
    # 4x double-buffered tiles must fit comfortably:
    #   ~4 MiB on 64 MiB parts (v7x), ~8 MiB on 128 MiB parts (v5e/v6e).
    return 8 * _MiB if vmem_total >= 128 * _MiB else 4 * _MiB


def _prefers_bf16_math():
    # bf16 VPU/EUP exists on v6e/v7x but not v5e; if we cannot positively
    # identify the chip, fall back to f32 (correct everywhere).
    try:
        name = str(pltpu.get_tpu_info().chip_version).lower()
    except Exception:
        return False
    return any(tag in name for tag in ("v6", "v7", "trillium"))


def _compute_dtype(x_dtype):
    if jnp.dtype(x_dtype) == jnp.dtype(jnp.bfloat16) and _prefers_bf16_math():
        return jnp.bfloat16
    return jnp.float32


def _pick_cols_tile(cols128):
    """Largest lane tile (multiple of 128, <= 2048) whose padding waste is
    <= 12.5% of the (already 128-aligned) column count."""
    for ct in (2048, 1024, 512, 256, 128):
        if ct <= cols128 and (_round_up(cols128, ct) - cols128) * 8 <= cols128:
            return ct
    return _LANE


def _plan_tiles(rows, cols, itemsize, target_tile_bytes, min_steps=8):
    """Choose (rows_tile, cols_tile, rows_pad, cols_pad):
       cols_tile % 128 == 0, rows_tile % 8 == 0, tile bytes ~<= target,
       >= min_steps grid steps when the array is large enough, and a
       preference for an even total step count (v7x megacore balance)."""
    cols128 = _round_up(max(cols, 1), _LANE)
    cols_tile = _pick_cols_tile(cols128)
    cols_pad = _round_up(cols128, cols_tile)
    col_steps = cols_pad // cols_tile

    rows_min = _round_up(max(rows, 1), _SUBLANE)
    rt = max(_SUBLANE,
             (target_tile_bytes // (cols_tile * itemsize)) // _SUBLANE * _SUBLANE)
    rt = min(rt, rows_min)

    # Prefer >= min_steps total grid steps (>= min_steps/2 per v7x core).
    row_steps_needed = -(-min_steps // col_steps)
    if row_steps_needed > 1 and rows_min // row_steps_needed >= _SUBLANE:
        rt = min(rt, (rows_min // row_steps_needed) // _SUBLANE * _SUBLANE)

    def total_steps(r):
        return (-(-rows_min // r)) * col_steps

    # Prefer an even step count so neither v7x TensorCore idles a step.
    if (total_steps(rt) % 2 == 1 and rt > _SUBLANE
            and total_steps(rt - _SUBLANE) % 2 == 0):
        rt -= _SUBLANE

    rows_pad = _round_up(rows_min, rt)
    return rt, cols_tile, rows_pad, cols_pad


def _vmem_limit_bytes(tile_bytes, vmem_total):
    # Double-buffered input + output ~= 4x tile bytes; request 5x + margin but
    # stay >= 16 MiB below physical capacity (compiler scratch headroom).
    want = max(16 * _MiB, 5 * tile_bytes + 8 * _MiB)
    cap = max(16 * _MiB, vmem_total - 16 * _MiB)
    return int(min(want, cap))


# --------------------------------------------------------------------------
# pallas_call wrapper
# --------------------------------------------------------------------------
def _call_swish_2d(x2d, beta_col, out_dtype, rows_tile, cols_tile, vmem_limit,
                   compute_dtype):
    rows_pad, cols_pad = x2d.shape
    grid = (rows_pad // rows_tile, cols_pad // cols_tile)
    data_spec = pl.BlockSpec((rows_tile, cols_tile), lambda i, j: (i, j))
    if beta_col is None:
        kernel = functools.partial(_swish_kernel, compute_dtype=compute_dtype)
        in_specs = [data_spec]
        args = (x2d,)
    else:
        kernel = functools.partial(_swish_beta_kernel,
                                   compute_dtype=compute_dtype)
        in_specs = [data_spec,
                    pl.BlockSpec((rows_tile, 1), lambda i, j: (i, 0))]
        args = (x2d, beta_col)

    return pl.pallas_call(
        kernel,
        out_shape=jax.ShapeDtypeStruct((rows_pad, cols_pad), out_dtype),
        grid_spec=pltpu.PrefetchScalarGridSpec(
            num_scalar_prefetch=0,
            grid=grid,
            in_specs=in_specs,
            out_specs=data_spec,
        ),
        compiler_params=pltpu.CompilerParams(
            dimension_semantics=("parallel", "parallel"),
            vmem_limit_bytes=vmem_limit,
        ),
    )(*args)


def swish(x_nchw, beta=None):
    """Swish forward matching the torch module.

    x_nchw : (N, C, H, W)
    beta   : None (trainable=False, beta == 1.0) or array of shape (1, C, 1, 1)
    """
    N, C, H, W = x_nchw.shape
    dtype = x_nchw.dtype
    itemsize = jnp.dtype(dtype).itemsize
    cdt = _compute_dtype(dtype)
    vmem_total = _vmem_capacity_bytes()
    target = _target_tile_bytes(vmem_total)

    if beta is None:
        # ---- non-trainable path: lane-dense flat re-tiling, no beta stream --
        total = N * C * H * W
        cols = _LANE * max(1, min(16, total // (_LANE * _SUBLANE)))
        rows = -(-total // cols)
        rows_tile, cols_tile, rows_pad, cols_pad = _plan_tiles(
            rows, cols, itemsize, target)
        x_flat = x_nchw.reshape(-1)
        padded_total = rows_pad * cols_pad
        if padded_total != total:
            x_flat = jnp.pad(x_flat, (0, padded_total - total))
        x2d = x_flat.reshape(rows_pad, cols_pad)
        vmem_limit = _vmem_limit_bytes(rows_tile * cols_tile * itemsize,
                                       vmem_total)
        out2d = _call_swish_2d(x2d, None, dtype, rows_tile, cols_tile,
                               vmem_limit, cdt)
        out_flat = out2d.reshape(-1)
        if padded_total != total:
            out_flat = out_flat[:total]
        return out_flat.reshape(N, C, H, W)

    # ---- trainable path: (N*C, H*W) layout, per-row beta column ------------
    rows, cols = N * C, H * W
    rows_tile, cols_tile, rows_pad, cols_pad = _plan_tiles(
        rows, cols, itemsize, target)
    x2d = x_nchw.reshape(rows, cols)
    if (rows_pad, cols_pad) != (rows, cols):
        # swish(0) == 0, and the padded region is sliced off afterwards anyway.
        x2d = jnp.pad(x2d, ((0, rows_pad - rows), (0, cols_pad - cols)))
    beta_col = jnp.broadcast_to(jnp.reshape(beta, (1, C)).astype(cdt),
                                (N, C)).reshape(rows, 1)
    if rows_pad != rows:
        beta_col = jnp.pad(beta_col, ((0, rows_pad - rows), (0, 0)))
    vmem_limit = _vmem_limit_bytes(rows_tile * cols_tile * itemsize, vmem_total)
    out2d = _call_swish_2d(x2d, beta_col, dtype, rows_tile, cols_tile,
                           vmem_limit, cdt)
    return out2d[:rows, :cols].reshape(N, C, H, W)


# --------------------------------------------------------------------------
# Self-test
# --------------------------------------------------------------------------
if __name__ == "__main__":
    key = jax.random.PRNGKey(0)
    N, C, H, W = 2, 4, 16, 16
    x = jax.random.normal(key, (N, C, H, W), dtype=jnp.float32)

    # trainable=True: beta initialized to ones, as in
    # nn.Parameter(torch.ones((1, dim, 1, 1))).
    beta = jnp.ones((1, C, 1, 1), dtype=jnp.float32)
    out_trainable = swish(x, beta)
    out_fixed = swish(x, None)     # trainable=False path

    # Awkward non-128-aligned shape with beta != 1 exercises the padded
    # lane-dense path and the beta placement.
    N2, C2, H2, W2 = 2, 3, 7, 7
    x2 = jax.random.normal(jax.random.PRNGKey(1), (N2, C2, H2, W2),
                           dtype=jnp.float32)
    beta2 = 0.5 * jnp.ones((1, C2, 1, 1), dtype=jnp.float32)
    out2_trainable = swish(x2, beta2)
    out2_fixed = swish(x2, None)

    jax.block_until_ready((out_trainable, out_fixed,
                           out2_trainable, out2_fixed))

    def ref(xv, b):
        xb = xv if b is None else b * xv
        return xb * jax.nn.sigmoid(xb)

    assert jnp.allclose(out_trainable, ref(x, beta), atol=1e-6, rtol=1e-6)
    assert jnp.allclose(out_fixed, ref(x, None), atol=1e-6, rtol=1e-6)
    assert jnp.allclose(out2_trainable, ref(x2, beta2), atol=1e-6, rtol=1e-6)
    assert jnp.allclose(out2_fixed, ref(x2, None), atol=1e-6, rtol=1e-6)

    print("KERNEL_OK")
</pallas_src>

<mosaic_0001>
module attributes {stable_mosaic.version = 11 : i64} {
  func.func @_swish_beta_kernel(%arg0: i32, %arg1: i32, %arg2: memref<8x256xf32, #tpu.memory_space<vmem>>, %arg3: memref<8x1xf32, #tpu.memory_space<vmem>>, %arg4: memref<8x256xf32, #tpu.memory_space<vmem>>) attributes {dimension_semantics = [#tpu.dimension_semantics<parallel>, #tpu.dimension_semantics<parallel>], iteration_bounds = array<i64: 1, 1>, scalar_prefetch = 0 : i64, scratch_operands = 0 : i64, tpu.core_type = #tpu.core_type<tc>, window_params = [{transform_indices = @transform_0, window_bounds = array<i64: 8, 256>}, {transform_indices = @transform_1, window_bounds = array<i64: 8, 1>}, {transform_indices = @transform_2, window_bounds = array<i64: 8, 256>}]} {
    %c0 = arith.constant 0 : index
    %c0_0 = arith.constant 0 : index
    %0 = vector.load %arg2[%c0, %c0_0] : memref<8x256xf32, #tpu.memory_space<vmem>>, vector<8x256xf32>
    %c0_1 = arith.constant 0 : index
    %c0_2 = arith.constant 0 : index
    %1 = vector.load %arg3[%c0_1, %c0_2] : memref<8x1xf32, #tpu.memory_space<vmem>>, vector<8x1xf32>
    %2 = vector.broadcast %1 : vector<8x1xf32> to vector<8x256xf32>
    %3 = arith.mulf %0, %2 : vector<8x256xf32>
    %4 = arith.negf %3 : vector<8x256xf32>
    %5 = math.exp %4 : vector<8x256xf32>
    %cst = arith.constant 1.000000e+00 : f32
    %6 = vector.broadcast %cst : f32 to vector<8x256xf32>
    %7 = arith.addf %6, %5 : vector<8x256xf32>
    %8 = arith.divf %6, %7 : vector<8x256xf32>
    %9 = arith.mulf %3, %8 : vector<8x256xf32>
    %c0_3 = arith.constant 0 : index
    %c0_4 = arith.constant 0 : index
    %10 = vector.load %arg4[%c0_3, %c0_4] : memref<8x256xf32, #tpu.memory_space<vmem>>, vector<8x256xf32>
    tpu.vector_store %arg4[%c0_3, %c0_4], %9 {strides = array<i32>} : memref<8x256xf32, #tpu.memory_space<vmem>>, vector<8x256xf32>,
    return
  }
  func.func @transform_0(%arg0: i32, %arg1: i32) -> (i32, i32) {
    %c0_i32 = arith.constant 0 : i32
    return %arg0, %arg1 : i32, i32
  }
  func.func @transform_1(%arg0: i32, %arg1: i32) -> (i32, i32) {
    %c0_i32 = arith.constant 0 : i32
    %c0_i32_0 = arith.constant 0 : i32
    return %arg0, %c0_i32 : i32, i32
  }
  func.func @transform_2(%arg0: i32, %arg1: i32) -> (i32, i32) {
    %c0_i32 = arith.constant 0 : i32
    return %arg0, %arg1 : i32, i32
  }
}

</mosaic_0001>

<bundles_post_ra>
// kernel: tpu_custom_call.1
= control target key start
LH: loop header
LB: loop body
LE: loop exit
PB: predicated region body
PF: predicated region fallthrough
CT: control target
= control target key end

     0   :  { %7 = vsyncpa [#allocation3], 0  ;;  %s172_s0 = inlined_call_operand.hbm [shape: f32[8,256], index: 0, kind: input, shape index: {}]   ;;  %s173_s1 = inlined_call_operand.vmem [shape: f32[8,1], index: 1, kind: input, shape index: {}]   ;;  %s174_s2 = inlined_call_operand.hbm [shape: f32[8,256], index: 2, kind: output, shape index: {}]  }
   0x1   :  { %8 = vsyncpa [#allocation4], 0  ;;  %s127_s9 = smov [#allocation2]   ;;  %s79_s13 = scalar_lea.hbm %s172_s0, 256 }
   0x2   :  { %s15_s10 = sshll.u32 %s127_s9, 4  ;;  %p80_p0 = scmp.ne.s32.totalorder %s172_s0, %s79_s13  ;;  %s16_s10 = int_to_ptr.vmem [resolvable:$true] %s15_s10 }
   0x3   :  { %p83_p1 = scmp.lt.u32.totalorder %s79_s13, %s172_s0 }
   0x5   :  { %p85_p2 = pnand %p83_p1, %p80_p0 }
   0x7   :  { %88 = shalt.err (!%p85_p2)
}
   0x8   :  { %s89_s18 = scalar_lea.vmem %s16_s10, 256  ;;  %p94_p4 = scmp.lt.s32.totalorder %s16_s10, %s16_s10 }
   0x9   :  { %p90_p3 = scmp.ne.s32.totalorder %s16_s10, %s89_s18  ;;  %p95_p5 = scmp.lt.s32.totalorder %s89_s18, %s89_s18 }
   0xb   :  { %p96_p6 = por %p95_p5, %p94_p4 }
   0xd   :  { %p97_p7 = pnand %p96_p6, %p90_p3 }
   0xf   :  { %100 = shalt.err (!%p97_p7)
}
  0x10   :  { %18 = dma.hbm_to_vmem [thread:$0]  %s172_s0, 256, %s16_s10, [#allocation3]  }
  0x11   :  { %123 = dma.done.wait [#allocation3], 256  }
  0x12   :  { %124 = vsyncadd [#allocation3], 4294967040  ;;  %v128_v0 = vmov 0   ;;  %v26_v1 = vld [vmem:[%s173_s1] sm:$0xff]  ;;  %v25_v3 = vld [vmem:[#allocation2 + $0x8] sm:$0xff]  ;;  %s129_s0 = smov [#allocation5]  }
  0x13   :  { %70 = vset.pattern.permute.xlu0 %v128_v0  ;;  %v24_v2 = vld [vmem:[#allocation2] sm:$0xff]  ;;  %s56_s23 = sshll.u32 %s129_s0, 4  ;;  %s57_s23 = int_to_ptr.vmem [resolvable:$true] %s56_s23 }
  0x14   :  { %29 = vperm.xlu0 %70, %v26_v1   ;;  %s101_s1 = scalar_lea.vmem %s57_s23, 256  ;;  %p106_p9 = scmp.lt.s32.totalorder %s57_s23, %s57_s23 }
  0x15   :  { %p102_p8 = scmp.ne.s32.totalorder %s57_s23, %s101_s1  ;;  %p107_p10 = scmp.lt.s32.totalorder %s101_s1, %s101_s1 }
  0x17   :  { %p108_p11 = por %p107_p10, %p106_p9 }
  0x19   :  { %p109_p12 = pnand %p108_p11, %p102_p8 }
  0x93   :  { %v30_v4 = vpop.permute.xlu0 %29 }
  0x94   :  { %v32_v5 = vmul.f32 %v30_v4, %v24_v2  ;;  %v33_v6 = vmul.f32 %v30_v4, %v25_v3 }
  0x96   :  { %v65_v7 = vmul.f32 -1.442695, %v32_v5  ;;  %v66_v8 = vmul.f32 -1.442695, %v33_v6 }
  0x98   :  { %71 = vpow2.f32 %v65_v7 }
  0x99   :  { %73 = vpow2.f32 %v66_v8 }
  0xa2   :  { %v72_v9 = vpop.eup %71 }
  0xa3   :  { %v74_v10 = vpop.eup %73  ;;  %v40_v11 = vadd.f32 1.0, %v72_v9 }
  0xa4   :  { %v41_v12 = vadd.f32 1.0, %v74_v10 }
  0xa5   :  { %75 = vrcp.f32 %v40_v11 }
  0xa6   :  { %77 = vrcp.f32 %v41_v12 }
  0xaf   :  { %v76_v13 = vpop.eup %75 }
  0xb0   :  { %v78_v14 = vpop.eup %77  ;;  %v46_v15 = vmul.f32 %v76_v13, %v32_v5 }
  0xb1   :  { %v47_v16 = vmul.f32 %v78_v14, %v33_v6 }
  0xb2   :  { %48 = vst [vmem:[#allocation5] sm:$0xff] %v46_v15 }
  0xb3   :  { %49 = vst [vmem:[#allocation5 + $0x8] sm:$0xff] %v47_v16 }
  0xb4   :  { %112 = shalt.err (!%p109_p12)
}
  0xb5   :  { %s113_s26 = scalar_lea.hbm %s174_s2, 256 }
  0xb6   :  { %p114_p13 = scmp.ne.s32.totalorder %s174_s2, %s113_s26  ;;  %p117_p0 = scmp.lt.u32.totalorder %s113_s26, %s174_s2 }
  0xb8   :  { %p119_p1 = pnand %p117_p0, %p114_p13 }
  0xba   :  { %122 = shalt.err (!%p119_p1)
}
  0xbb   :  { %59 = dma.vmem_to_hbm [thread:$0]  %s57_s23, 256, %s174_s2, [#allocation4]  }
  0xbc   :  { %125 = dma.done.wait [#allocation4], 256  }
  0xbd   :  { %126 = vsyncadd [#allocation4], 4294967040 }
  0xbe   :  { %63 = vsyncpa [#allocation3], 1 }
  0xbf   :  { %64 = vsyncpa [#allocation4], 1 }

</bundles_post_ra>
